<compile_context>
chip_gen: v6e
topology: v6e:2x2x1
jax: 0.10.0
libtpu: 0.0.40
codegen_flags: <defaults>
</compile_context>

<pallas_src>
import jax
import jax.numpy as jnp
from jax.experimental import pallas as pl
from jax.experimental.pallas import tpu as pltpu


def _round_up(x, m):
    return ((x + m - 1) // m) * m


# ----------------------------- Pallas kernel ------------------------------ #
def _fcomb_kernel(x_ref, zb_ref, w1_ref, w2_ref, b2_ref, w3_ref, b3_ref, o_ref):
    # x_ref : (in_ch,  TM)      feature tile, pixels lane-dense
    # zb_ref: (hidden, 1)       per-batch latent bias = W1_z^T z + b1  (f32)
    # w1_ref: (hidden, in_ch)   pre-transposed layer-1 feature weights
    # w2_ref: (hidden, hidden)  pre-transposed layer-2 weights
    # b2_ref: (hidden, 1)
    # w3_ref: (seg_out, hidden) pre-transposed output projection
    # b3_ref: (seg_out, 1)
    # o_ref : (seg_out, TM)     lane-dense output tile
    x = x_ref[...].astype(w1_ref.dtype)          # per-tile cast (free on VPU)

    # layer 1: 1x1 conv (channels-first matmul) + latent-folded bias + ReLU
    h = jnp.dot(w1_ref[...], x, preferred_element_type=jnp.float32) + zb_ref[...]
    h = jnp.maximum(h, 0.0)

    # layer 2: 1x1 conv + bias + ReLU (bias/ReLU stay f32)
    h = jnp.dot(w2_ref[...], h.astype(w2_ref.dtype),
                preferred_element_type=jnp.float32) + b2_ref[...]
    h = jnp.maximum(h, 0.0)

    # layer 3: projection to seg_out channels (no activation)
    o = jnp.dot(w3_ref[...], h.astype(w3_ref.dtype),
                preferred_element_type=jnp.float32) + b3_ref[...]
    o_ref[...] = o.astype(o_ref.dtype)


def fcomb_pallas(x, zb, w1t, w2t, b2, w3t, b3, *, tm, out_dtype=jnp.float32):
    """x: (B, in_ch, HW) channels-first.  tm must be a multiple of 128; the
    last pixel tile may be ragged (Pallas masks out-of-bounds stores)."""
    b, in_ch, hw = x.shape
    hidden = w1t.shape[0]
    seg_out = w3t.shape[0]
    assert tm % 128 == 0

    grid = (b, pl.cdiv(hw, tm))        # ragged last tile handled by masking
    full2 = lambda bi, i: (0, 0)       # weights / biases: whole array, VMEM-resident

    return pl.pallas_call(
        _fcomb_kernel,
        out_shape=jax.ShapeDtypeStruct((b, seg_out, hw), out_dtype),
        grid_spec=pltpu.PrefetchScalarGridSpec(
            num_scalar_prefetch=0,
            grid=grid,
            in_specs=[
                pl.BlockSpec((pl.Squeezed(), in_ch, tm), lambda bi, i: (bi, 0, i)),
                pl.BlockSpec((pl.Squeezed(), hidden, 1), lambda bi, i: (bi, 0, 0)),
                pl.BlockSpec((hidden, in_ch), full2),
                pl.BlockSpec((hidden, hidden), full2),
                pl.BlockSpec((hidden, 1), full2),
                pl.BlockSpec((seg_out, hidden), full2),
                pl.BlockSpec((seg_out, 1), full2),
            ],
            out_specs=pl.BlockSpec((pl.Squeezed(), seg_out, tm),
                                   lambda bi, i: (bi, 0, i)),
        ),
        compiler_params=pltpu.CompilerParams(
            dimension_semantics=("parallel", "parallel"),
        ),
    )(x, zb, w1t, w2t, b2, w3t, b3)


# ----------------------------- Tile selection ------------------------------ #
def _choose_tile(hw, batch, x_itemsize, out_itemsize, in_ch, seg_out,
                 tm_max, vmem_budget_bytes):
    # Double-buffered per-step footprint of the streaming arrays:
    #   2 * (in_ch * x_itemsize + seg_out * out_itemsize) * tm  bytes.
    bytes_per_px = 2 * (in_ch * x_itemsize + seg_out * out_itemsize)
    tm = min(int(tm_max), max(128, int(vmem_budget_bytes) // bytes_per_px))
    tm = max(128, (tm // 128) * 128)            # lane-aligned
    tm = min(tm, _round_up(hw, 128))            # never larger than needed
    # v7x megacore: keep the grid product >= 2 when batch == 1.
    if batch == 1 and hw > 128:
        tm = min(tm, _round_up(-(-hw // 2), 128))
    return tm


# ------------------------------ Module glue ------------------------------- #
def make_fcomb_params(key, in_ch, latent_dim, seg_out_channels, hidden_ch):
    """Deterministic synthetic parameters (matmul form of the 1x1 convs)."""
    cin = in_ch + latent_dim
    ks = jax.random.split(key, 6)
    init = lambda k, shape, fan_in: (
        jax.random.uniform(k, shape, jnp.float32, -1.0, 1.0) / jnp.sqrt(fan_in)
    )
    return {
        "w1": init(ks[0], (cin, hidden_ch), cin),
        "b1": init(ks[1], (hidden_ch,), cin),
        "w2": init(ks[2], (hidden_ch, hidden_ch), hidden_ch),
        "b2": init(ks[3], (hidden_ch,), hidden_ch),
        "w3": init(ks[4], (hidden_ch, seg_out_channels), hidden_ch),
        "b3": init(ks[5], (seg_out_channels,), hidden_ch),
    }


def fcomb_forward(feat_nchw, z, params, *, tm_max=65536,
                  vmem_budget_bytes=12 * 1024 * 1024,
                  weight_dtype=jnp.float32, out_dtype=jnp.float32):
    """feat_nchw: (B, C, H, W); z: (B, latent_dim). Returns (B, seg_out, H, W).

    weight_dtype=jnp.bfloat16 enables bf16 MXU operands (x is cast per-tile in
    the kernel; pass bf16 feat from upstream to also halve the HBM read).
    """
    b, c, h, w = feat_nchw.shape
    in_ch = c
    seg_out = params["w3"].shape[1]
    hw = h * w

    # Channels-first flatten: no transpose, no padding, no extra HBM pass.
    x = feat_nchw.reshape(b, c, hw)

    # Fold the latent into a per-batch layer-1 bias (kills concat + broadcast):
    #   relu(W1^T [feat; z] + b1) == relu(W1_feat^T feat + (W1_z^T z + b1))
    w1_feat = params["w1"][:in_ch]                       # (in_ch, hidden)
    w1_z = params["w1"][in_ch:]                          # (latent, hidden)
    zb = z.astype(jnp.float32) @ w1_z.astype(jnp.float32) + params["b1"]
    zb = zb[:, :, None].astype(jnp.float32)              # (B, hidden, 1)

    # Pre-transpose weights to channels-first (out, in) orientation.
    w1t = w1_feat.T.astype(weight_dtype)                 # (hidden, in_ch)
    w2t = params["w2"].T.astype(weight_dtype)            # (hidden, hidden)
    w3t = params["w3"].T.astype(weight_dtype)            # (seg_out, hidden)
    b2 = params["b2"][:, None].astype(jnp.float32)       # (hidden, 1)
    b3 = params["b3"][:, None].astype(jnp.float32)       # (seg_out, 1)

    tm = _choose_tile(hw, b, jnp.dtype(x.dtype).itemsize,
                      jnp.dtype(out_dtype).itemsize,
                      in_ch, seg_out, tm_max, vmem_budget_bytes)

    out = fcomb_pallas(x, zb, w1t, w2t, b2, w3t, b3, tm=tm, out_dtype=out_dtype)
    return out.reshape(b, seg_out, h, w)


# ------------------------------ Reference --------------------------------- #
def fcomb_reference(feat_nchw, z, params):
    b, c, h, w = feat_nchw.shape
    latent = z.shape[1]
    zb = jnp.broadcast_to(z[:, :, None, None], (b, latent, h, w))
    x = jnp.concatenate([feat_nchw, zb], axis=1)                  # (B, C+L, H, W)
    xf = jnp.transpose(x, (0, 2, 3, 1)).reshape(-1, c + latent).astype(jnp.float32)
    hdd = jnp.maximum(xf @ params["w1"] + params["b1"], 0.0)
    hdd = jnp.maximum(hdd @ params["w2"] + params["b2"], 0.0)
    o = hdd @ params["w3"] + params["b3"]
    o = o.reshape(b, h, w, -1)
    return jnp.transpose(o, (0, 3, 1, 2))


# --------------------------------- Main ------------------------------------ #
if __name__ == "__main__":
    B, IN_CH, LATENT, SEG_OUT, HIDDEN = 2, 4, 4, 3, 32
    H = W = 16

    key = jax.random.PRNGKey(0)
    k_feat, k_z, k_params = jax.random.split(key, 3)

    feat = jax.random.normal(k_feat, (B, IN_CH, H, W), jnp.float32)
    z = jax.random.normal(k_z, (B, LATENT), jnp.float32)
    params = make_fcomb_params(k_params, IN_CH, LATENT, SEG_OUT, HIDDEN)

    out = fcomb_forward(feat, z, params)
    out = jax.block_until_ready(out)

    ref = jax.block_until_ready(fcomb_reference(feat, z, params))
    assert out.shape == (B, SEG_OUT, H, W), out.shape
    assert jnp.allclose(out, ref, atol=1e-4, rtol=1e-4), "mismatch vs reference"

    print("KERNEL_OK")
</pallas_src>

<mosaic_0001>
module attributes {stable_mosaic.version = 11 : i64} {
  func.func @_fcomb_kernel(%arg0: i32, %arg1: i32, %arg2: memref<1x4x256xf32, #tpu.memory_space<vmem>>, %arg3: memref<1x32x1xf32, #tpu.memory_space<vmem>>, %arg4: memref<32x4xf32, #tpu.memory_space<vmem>>, %arg5: memref<32x32xf32, #tpu.memory_space<vmem>>, %arg6: memref<32x1xf32, #tpu.memory_space<vmem>>, %arg7: memref<3x32xf32, #tpu.memory_space<vmem>>, %arg8: memref<3x1xf32, #tpu.memory_space<vmem>>, %arg9: memref<1x3x256xf32, #tpu.memory_space<vmem>>) attributes {dimension_semantics = [#tpu.dimension_semantics<parallel>, #tpu.dimension_semantics<parallel>], iteration_bounds = array<i64: 2, 1>, scalar_prefetch = 0 : i64, scratch_operands = 0 : i64, tpu.core_type = #tpu.core_type<tc>, window_params = [{transform_indices = @transform_0, window_bounds = array<i64: 1, 4, 256>}, {transform_indices = @transform_1, window_bounds = array<i64: 1, 32, 1>}, {pipeline_mode = #tpu.pipeline_mode<synchronous>, transform_indices = @transform_2, window_bounds = array<i64: 32, 4>}, {pipeline_mode = #tpu.pipeline_mode<synchronous>, transform_indices = @transform_3, window_bounds = array<i64: 32, 32>}, {pipeline_mode = #tpu.pipeline_mode<synchronous>, transform_indices = @transform_4, window_bounds = array<i64: 32, 1>}, {pipeline_mode = #tpu.pipeline_mode<synchronous>, transform_indices = @transform_5, window_bounds = array<i64: 3, 32>}, {pipeline_mode = #tpu.pipeline_mode<synchronous>, transform_indices = @transform_6, window_bounds = array<i64: 3, 1>}, {transform_indices = @transform_7, window_bounds = array<i64: 1, 3, 256>}]} {
    %c0 = arith.constant 0 : index
    %c0_0 = arith.constant 0 : index
    %c0_1 = arith.constant 0 : index
    %0 = vector.load %arg2[%c0, %c0_0, %c0_1] : memref<1x4x256xf32, #tpu.memory_space<vmem>>, vector<1x4x256xf32>
    %1 = vector.shape_cast %0 : vector<1x4x256xf32> to vector<4x256xf32>
    %c0_2 = arith.constant 0 : index
    %c0_3 = arith.constant 0 : index
    %2 = vector.load %arg4[%c0_2, %c0_3] : memref<32x4xf32, #tpu.memory_space<vmem>>, vector<32x4xf32>
    %cst = arith.constant dense<0.000000e+00> : vector<32x256xf32>
    %3 = tpu.matmul %2, %1, %cst {dimension_numbers = #tpu.dot_dimension_numbers<[1], [0], [0], [1], [0, 0, 1, 1], [], []>} : vector<32x4xf32>, vector<4x256xf32>, vector<32x256xf32> -> vector<32x256xf32>
    %c0_4 = arith.constant 0 : index
    %c0_5 = arith.constant 0 : index
    %c0_6 = arith.constant 0 : index
    %4 = vector.load %arg3[%c0_4, %c0_5, %c0_6] : memref<1x32x1xf32, #tpu.memory_space<vmem>>, vector<1x32x1xf32>
    %5 = vector.shape_cast %4 : vector<1x32x1xf32> to vector<32x1xf32>
    %6 = vector.broadcast %5 : vector<32x1xf32> to vector<32x256xf32>
    %7 = arith.addf %3, %6 : vector<32x256xf32>
    %cst_7 = arith.constant 0.000000e+00 : f32
    %8 = vector.broadcast %cst_7 : f32 to vector<32x256xf32>
    %9 = arith.maximumf %7, %8 : vector<32x256xf32>
    %c0_8 = arith.constant 0 : index
    %c0_9 = arith.constant 0 : index
    %10 = vector.load %arg5[%c0_8, %c0_9] : memref<32x32xf32, #tpu.memory_space<vmem>>, vector<32x32xf32>
    %cst_10 = arith.constant dense<0.000000e+00> : vector<32x256xf32>
    %11 = tpu.matmul %10, %9, %cst_10 {dimension_numbers = #tpu.dot_dimension_numbers<[1], [0], [0], [1], [0, 0, 1, 1], [], []>} : vector<32x32xf32>, vector<32x256xf32>, vector<32x256xf32> -> vector<32x256xf32>
    %c0_11 = arith.constant 0 : index
    %c0_12 = arith.constant 0 : index
    %12 = vector.load %arg6[%c0_11, %c0_12] : memref<32x1xf32, #tpu.memory_space<vmem>>, vector<32x1xf32>
    %13 = vector.broadcast %12 : vector<32x1xf32> to vector<32x256xf32>
    %14 = arith.addf %11, %13 : vector<32x256xf32>
    %cst_13 = arith.constant 0.000000e+00 : f32
    %15 = vector.broadcast %cst_13 : f32 to vector<32x256xf32>
    %16 = arith.maximumf %14, %15 : vector<32x256xf32>
    %c0_14 = arith.constant 0 : index
    %c0_15 = arith.constant 0 : index
    %17 = vector.load %arg7[%c0_14, %c0_15] : memref<3x32xf32, #tpu.memory_space<vmem>>, vector<3x32xf32>
    %cst_16 = arith.constant dense<0.000000e+00> : vector<3x256xf32>
    %18 = tpu.matmul %17, %16, %cst_16 {dimension_numbers = #tpu.dot_dimension_numbers<[1], [0], [0], [1], [0, 0, 1, 1], [], []>} : vector<3x32xf32>, vector<32x256xf32>, vector<3x256xf32> -> vector<3x256xf32>
    %c0_17 = arith.constant 0 : index
    %c0_18 = arith.constant 0 : index
    %19 = vector.load %arg8[%c0_17, %c0_18] : memref<3x1xf32, #tpu.memory_space<vmem>>, vector<3x1xf32>
    %20 = vector.broadcast %19 : vector<3x1xf32> to vector<3x256xf32>
    %21 = arith.addf %18, %20 : vector<3x256xf32>
    %c0_19 = arith.constant 0 : index
    %c0_20 = arith.constant 0 : index
    %c0_21 = arith.constant 0 : index
    %22 = vector.load %arg9[%c0_19, %c0_20, %c0_21] : memref<1x3x256xf32, #tpu.memory_space<vmem>>, vector<1x3x256xf32>
    %23 = vector.shape_cast %22 : vector<1x3x256xf32> to vector<3x256xf32>
    %24 = vector.shape_cast %21 : vector<3x256xf32> to vector<1x3x256xf32>
    tpu.vector_store %arg9[%c0_19, %c0_20, %c0_21], %24 {strides = array<i32>} : memref<1x3x256xf32, #tpu.memory_space<vmem>>, vector<1x3x256xf32>,
    return
  }
  func.func @transform_0(%arg0: i32, %arg1: i32) -> (i32, i32, i32) {
    %c0_i32 = arith.constant 0 : i32
    %c0_i32_0 = arith.constant 0 : i32
    return %arg0, %c0_i32, %arg1 : i32, i32, i32
  }
  func.func @transform_1(%arg0: i32, %arg1: i32) -> (i32, i32, i32) {
    %c0_i32 = arith.constant 0 : i32
    %c0_i32_0 = arith.constant 0 : i32
    %c0_i32_1 = arith.constant 0 : i32
    return %arg0, %c0_i32, %c0_i32_0 : i32, i32, i32
  }
  func.func @transform_2(%arg0: i32, %arg1: i32) -> (i32, i32) {
    %c0_i32 = arith.constant 0 : i32
    %c0_i32_0 = arith.constant 0 : i32
    %c0_i32_1 = arith.constant 0 : i32
    return %c0_i32, %c0_i32_0 : i32, i32
  }
  func.func @transform_3(%arg0: i32, %arg1: i32) -> (i32, i32) {
    %c0_i32 = arith.constant 0 : i32
    %c0_i32_0 = arith.constant 0 : i32
    %c0_i32_1 = arith.constant 0 : i32
    return %c0_i32, %c0_i32_0 : i32, i32
  }
  func.func @transform_4(%arg0: i32, %arg1: i32) -> (i32, i32) {
    %c0_i32 = arith.constant 0 : i32
    %c0_i32_0 = arith.constant 0 : i32
    %c0_i32_1 = arith.constant 0 : i32
    return %c0_i32, %c0_i32_0 : i32, i32
  }
  func.func @transform_5(%arg0: i32, %arg1: i32) -> (i32, i32) {
    %c0_i32 = arith.constant 0 : i32
    %c0_i32_0 = arith.constant 0 : i32
    %c0_i32_1 = arith.constant 0 : i32
    return %c0_i32, %c0_i32_0 : i32, i32
  }
  func.func @transform_6(%arg0: i32, %arg1: i32) -> (i32, i32) {
    %c0_i32 = arith.constant 0 : i32
    %c0_i32_0 = arith.constant 0 : i32
    %c0_i32_1 = arith.constant 0 : i32
    return %c0_i32, %c0_i32_0 : i32, i32
  }
  func.func @transform_7(%arg0: i32, %arg1: i32) -> (i32, i32, i32) {
    %c0_i32 = arith.constant 0 : i32
    %c0_i32_0 = arith.constant 0 : i32
    return %arg0, %c0_i32, %arg1 : i32, i32, i32
  }
}

</mosaic_0001>

<bundles_post_ra>
// kernel: tpu_custom_call.1
= control target key start
LH: loop header
LB: loop body
LE: loop exit
PB: predicated region body
PF: predicated region fallthrough
CT: control target
= control target key end

     0   :  { %s929_s24 = smov 0   ;;  %s931_s25 = smov 0   ;;  %s1033_s0 = inlined_call_operand.vmem [shape: f32[2,4,256], index: 0, kind: input, shape index: {}]   ;;  %s1034_s1 = inlined_call_operand.vmem [shape: f32[2,32,1], index: 1, kind: input, shape index: {}]   ;;  %s1035_s2 = inlined_call_operand.vmem [shape: f32[32,4], index: 2, kind: input, shape index: {}]   ;;  %s1036_s3 = inlined_call_operand.vmem [shape: f32[32,32], index: 3, kind: input, shape index: {}]   ;;  %s1037_s4 = inlined_call_operand.vmem [shape: f32[32,1], index: 4, kind: input, shape index: {}]   ;;  %s1038_s5 = inlined_call_operand.vmem [shape: f32[3,32], index: 5, kind: input, shape index: {}]   ;;  %s1039_s6 = inlined_call_operand.vmem [shape: f32[3,1], index: 6, kind: input, shape index: {}]   ;;  %s1040_s7 = inlined_call_operand.vmem [shape: f32[2,3,256], index: 7, kind: output, shape index: {}]  }
   0x1   :  { %s933_s26 = smov 0  }
   0x2 LB: > { %s29_s27 = sadd.s32 1, %s881_s25  ;;  %p811_p0 = scmp.ge.s32.totalorder %s885_s26, 1  ;;  %s885_s26 = sphi %s933_s26, %s17_s26   ;;  %s881_s25 = sphi %s931_s25, %s1042_s25   ;;  %s877_s24 = sphi %s929_s24, %s1041_s24  }
   0x3   : > { %p31_p1 = scmp.ge.s32.totalorder %s29_s27, 2  ;;  %p268_p2 = scmp.lt.s32.totalorder %s885_s26, 3 }
   0x5   : > { %s1044_s27 = smov (%p31_p1, %s29_s27), 0  ;;  %p269_p3 = pnand %p811_p0, %p268_p2 }
   0x6   : > { %p314_p4 = scmp.lt.s32.totalorder (!%p269_p3), %s877_s24, 1 }
   0x7   : > { %272 = sbr.rel (%p269_p3) target bundleno = 658 (0x292), region = 48 }
   0xc   : > { %v887_v0 = vmov 0.0   ;;  %s1046_s24 = smov (!%p314_p4, %s877_s24), 1  ;;  %v888_v1 = vmov 0   ;;  %vm382_vm0 = vcmask 1043456   ;;  %v339_v6 = vld [vmem:[%s1035_s2] sm:$0xff]  ;;  %vm369_vm1 = vcmask 31744  }
   0xd   : > { %451 = vmatprep.mubr.f32.mxu0 %v887_v0  ;;  %589 = vmatprep.mubr.f32.mxu1 %v887_v0  ;;  %s831_s28 = sshll.u32 %s1046_s24, 3  ;;  %s832_s29 = sshll.u32 %s1046_s24, 5  ;;  %v340_v9 = vld [vmem:[%s1035_s2 + $0x8] sm:$0xff]  ;;  %v491_v10 = vld [vmem:[%s1037_s4 + $0x18] sm:$0xff]  ;;  %v490_v11 = vld [vmem:[%s1037_s4 + $0x10] sm:$0xff]  ;;  %vm512_vm2 = vcmask 261120  }
   0xe   : > { %861 = vset.pattern.permute.xlu1 %v888_v1  ;;  %860 = vset.pattern.permute.xlu0 %v888_v1  ;;  %s321_s9 = scalar_lea.vmem %s1033_s0, %s831_s28  ;;  %s327_s12 = scalar_lea.vmem %s1034_s1, %s832_s29  ;;  %v341_v12 = vld [vmem:[%s1035_s2 + $0x10] sm:$0xff]  ;;  %v489_v13 = vld [vmem:[%s1037_s4 + $0x8] sm:$0xff]  ;;  %v488_v14 = vld [vmem:[%s1037_s4] sm:$0xff] }
   0xf   : > { %v338_v2 = vld [vmem:[%s321_s9] sm:$0xff]  ;;  %v346_v4 = vld [vmem:[%s327_s12 + $0x18] sm:$0xff]  ;;  %v344_v5 = vld [vmem:[%s327_s12 + $0x8] sm:$0xff]  ;;  %s336_s30 = scalar_lea.vmem %s1040_s7, %s831_s28 }
  0x10   : > { %v368_v3 = vcombine.high %v338_v2, %v338_v2  ;;  %364 = vperm.xlu0 %860, %v346_v4   ;;  %354 = vperm.xlu1 %861, %v344_v5   ;;  %v345_v7 = vld [vmem:[%s327_s12 + $0x10] sm:$0xff]  ;;  %v343_v8 = vld [vmem:[%s327_s12] sm:$0xff]  ;;  %v342_v15 = vld [vmem:[%s1035_s2 + $0x18] sm:$0xff] }
  0x11   : > { %v623_v16 = vld [vmem:[%s1039_s6] sm:$0x7]  ;;  %v485_v46 = vld [vmem:[%s1036_s3 + $0x8] sm:$0xff]  ;;  %v486_v47 = vld [vmem:[%s1036_s3 + $0x10] sm:$0xff] }
  0x12   : > { %818 = vmatprep.subr.msk.mxu0 %vm382_vm0, %v368_v3  ;;  %v484_v45 = vld [vmem:[%s1036_s3] sm:$0xff]  ;;  %v487_v48 = vld [vmem:[%s1036_s3 + $0x18] sm:$0xff] }
  0x13   : > { %819 = vmatpush1.msk.msra.mxu0 %vm382_vm0, %v338_v2 }
  0x14   : > { %820 = vmatmul.mubr.msk.f32.vlgmr.msra.gmra.mxu0 %vm369_vm1, %v339_v6  ;;  %359 = vperm.xlu0 %860, %v345_v7  }
  0x15   : > { %457 = vmatprep.mubr.f32.mxu0 %v887_v0  ;;  %349 = vperm.xlu1 %861, %v343_v8  }
  0x18   : > { %821 = vmatmul.mubr.msk.f32.gmra.mxu0 %vm369_vm1, %v340_v9  ;;  %509 = vperm.xlu0 %860, %v491_v10  }
  0x19   : > { %463 = vmatprep.mubr.f32.mxu0 %v887_v0  ;;  %504 = vperm.xlu1 %861, %v490_v11  }
  0x1c   : > { %822 = vmatmul.mubr.msk.f32.gmra.mxu0 %vm369_vm1, %v341_v12  ;;  %499 = vperm.xlu0 %860, %v489_v13   ;;  %v622_v13 = vld [vmem:[%s1038_s5] sm:$0x7] }
  0x1d   : > { %469 = vmatprep.mubr.f32.mxu0 %v887_v0  ;;  %494 = vperm.xlu1 %861, %v488_v14  }
  0x20   : > { %823 = vmatmul.mubr.msk.f32.gmra.mxu0 %vm369_vm1, %v342_v15  ;;  %626 = vperm.xlu0 %860, %v623_v16  }
  0x21   : > { %696 = vmatprep.mubr.f32.mxu0 %v887_v0 }
  0x8b   : > { %v365_v21 = vpop.permute.xlu0 %364  ;;  %v355_v24 = vpop.permute.xlu1 %354 }
  0x8f   : > { %v360_v26 = vpop.permute.xlu0 %359 }
  0x90   : > { %v350_v32 = vpop.permute.xlu1 %349 }
  0x93   : > { %v510_v54 = vpop.permute.xlu0 %509 }
  0x94   : > { %v505_v56 = vpop.permute.xlu1 %504 }
  0x97   : > { %v500_v62 = vpop.permute.xlu0 %499 }
  0x98   : > { %v495_v2 = vpop.permute.xlu1 %494 }
  0x9b   : > { %v627_v15 = vpop.permute.xlu0 %626 }
  0xd4   : > { %v453_v17 = vpop.f32.mrf.mxu0 }
  0xd5   : > { %v454_v39 = vadd.f32 %v453_v17, %v350_v32 }
  0xd6   : > { %v455_v18 = vpop.f32.mrf.mxu0 }
  0xd7   : > { %v456_v37 = vadd.f32 %v455_v18, %v350_v32  ;;  %v476_v44 = vmax.f32 %v454_v39, 0.0 }
  0xd8   : > { %v459_v19 = vpop.f32.mrf.mxu0 }
  0xd9   : > { %v460_v35 = vadd.f32 %v459_v19, %v355_v24  ;;  %v477_v43 = vmax.f32 %v456_v37, 0.0 }
  0xda   : > { %v461_v20 = vpop.f32.mrf.mxu0 }
  0xdb   : > { %v462_v33 = vadd.f32 %v461_v20, %v355_v24  ;;  %v478_v42 = vmax.f32 %v460_v35, 0.0 }
  0xdc   : > { %v465_v22 = vpop.f32.mrf.mxu0 }
  0xdd   : > { %v466_v31 = vadd.f32 %v465_v22, %v360_v26  ;;  %v479_v41 = vmax.f32 %v462_v33, 0.0 }
  0xde   : > { %v467_v23 = vpop.f32.mrf.mxu0 }
  0xdf   : > { %v468_v29 = vadd.f32 %v467_v23, %v360_v26  ;;  %v480_v40 = vmax.f32 %v466_v31, 0.0 }
  0xe0   : > { %v471_v25 = vpop.f32.mrf.mxu0 }
  0xe1   : > { %v472_v27 = vadd.f32 %v471_v25, %v365_v21  ;;  %v481_v38 = vmax.f32 %v468_v29, 0.0 }
  0xe2   : > { %v473_v28 = vpop.f32.mrf.mxu0 }
  0xe3   : > { %v474_v30 = vadd.f32 %v473_v28, %v365_v21  ;;  %v482_v36 = vmax.f32 %v472_v27, 0.0 }
  0xe5   : > { %v483_v34 = vmax.f32 %v474_v30, 0.0 }
  0xe7   : > { %549 = vmatprep.subr.mxu1 %v483_v34 }
  0xe8   : > { %550 = vmatpush1.msra.mxu1 %v482_v36 }
  0xe9   : > { %551 = vmatprep.subr.mxu1 %v481_v38 }
  0xea   : > { %552 = vmatpush1.msra.mxu1 %v480_v40 }
  0xeb   : > { %553 = vmatprep.subr.mxu1 %v479_v41 }
  0xec   : > { %554 = vmatpush1.msra.mxu1 %v478_v42 }
  0xed   : > { %555 = vmatprep.subr.mxu1 %v477_v43 }
  0xee   : > { %556 = vmatpush1.msra.mxu1 %v476_v44 }
  0xef   : > { %824 = vmatmul.mubr.msk.f32.vlgmr.msra.gmra.mxu1 %vm512_vm2, %v484_v45 }
  0xf0   : > { %595 = vmatprep.mubr.f32.mxu1 %v887_v0 }
  0xf3   : > { %825 = vmatmul.mubr.msk.f32.gmra.mxu1 %vm512_vm2, %v485_v46 }
  0xf4   : > { %601 = vmatprep.mubr.f32.mxu1 %v887_v0 }
  0xf7   : > { %826 = vmatmul.mubr.msk.f32.gmra.mxu1 %vm512_vm2, %v486_v47 }
  0xf8   : > { %607 = vmatprep.mubr.f32.mxu1 %v887_v0 }
  0xfb   : > { %827 = vmatmul.mubr.msk.f32.gmra.mxu1 %vm512_vm2, %v487_v48 }
 0x1af   : > { %v591_v49 = vpop.f32.mrf.mxu1 }
 0x1b0   : > { %v592_v7 = vadd.f32 %v591_v49, %v495_v2 }
 0x1b1   : > { %v593_v50 = vpop.f32.mrf.mxu1 }
 0x1b2   : > { %v594_v5 = vadd.f32 %v593_v50, %v495_v2  ;;  %v614_v12 = vmax.f32 %v592_v7, 0.0 }
 0x1b3   : > { %v597_v51 = vpop.f32.mrf.mxu1 }
 0x1b4   : > { %v598_v3 = vadd.f32 %v597_v51, %v500_v62  ;;  %v615_v11 = vmax.f32 %v594_v5, 0.0 }
 0x1b5   : > { %v599_v52 = vpop.f32.mrf.mxu1 }
 0x1b6   : > { %v600_v0 = vadd.f32 %v599_v52, %v500_v62  ;;  %v616_v10 = vmax.f32 %v598_v3, 0.0 }
 0x1b7   : > { %v603_v53 = vpop.f32.mrf.mxu1 }
 0x1b8   : > { %v604_v63 = vadd.f32 %v603_v53, %v505_v56  ;;  %v617_v9 = vmax.f32 %v600_v0, 0.0 }
 0x1b9   : > { %v605_v55 = vpop.f32.mrf.mxu1 }
 0x1ba   : > { %v606_v60 = vadd.f32 %v605_v55, %v505_v56  ;;  %v618_v8 = vmax.f32 %v604_v63, 0.0 }
 0x1bb   : > { %v609_v57 = vpop.f32.mrf.mxu1 }
 0x1bc   : > { %v610_v58 = vadd.f32 %v609_v57, %v510_v54  ;;  %v619_v6 = vmax.f32 %v606_v60, 0.0 }
 0x1bd   : > { %v611_v59 = vpop.f32.mrf.mxu1 }
 0x1be   : > { %v612_v61 = vadd.f32 %v611_v59, %v510_v54  ;;  %v620_v4 = vmax.f32 %v610_v58, 0.0 }
 0x1c0   : > { %v621_v1 = vmax.f32 %v612_v61, 0.0 }
 0x1c2   : > { %656 = vmatprep.subr.mxu0 %v621_v1 }
 0x1c3   : > { %657 = vmatpush1.msra.mxu0 %v620_v4 }
 0x1c4   : > { %658 = vmatprep.subr.mxu0 %v619_v6 }
 0x1c5   : > { %659 = vmatpush1.msra.mxu0 %v618_v8 }
 0x1c6   : > { %660 = vmatprep.subr.mxu0 %v617_v9 }
 0x1c7   : > { %661 = vmatpush1.msra.mxu0 %v616_v10 }
 0x1c8   : > { %662 = vmatprep.subr.mxu0 %v615_v11 }
 0x1c9   : > { %663 = vmatpush1.msra.mxu0 %v614_v12 }
 0x1ca   : > { %828 = vmatmul.mubr.msk.f32.vlgmr.msra.gmra.mxu0 %vm512_vm2, %v622_v13 }
 0x28a   : > { %v698_v14 = vpop.f32.mrf.mxu0 }
 0x28b   : > { %v699_v17 = vadd.f32 %v698_v14, %v627_v15 }
 0x28c   : > { %v700_v16 = vpop.f32.mrf.mxu0 }
 0x28d   : > { %v701_v18 = vadd.f32 %v700_v16, %v627_v15 }
 0x28f   : > { %v705_v19 = vcombine.low %v699_v17, %v701_v18 }
 0x291   : > { %707 = vst [vmem:[%s336_s30] sm:$0x77] %v705_v19 }
 0x292 PF: > { %s17_s26 = sadd.s32 1, %s885_s26   ;;  %s1041_s24 = smov %s881_s25 }
 0x293   : > { %p14_p5 = scmp.ge.s32.totalorder %s17_s26, 4   ;;  %s1042_s25 = smov %s1044_s27 }
 0x295   :  { %16 = sbr.rel (!%p14_p5) target bundleno = 2 (0x2), region = 81 }

</bundles_post_ra>
